<compile_context>
chip_gen: v5e
topology: v5e:2x2
jax: 0.10.0
libtpu: 0.0.40
codegen_flags: <defaults>
</compile_context>

<pallas_src>
import functools

import jax
import jax.numpy as jnp
from jax.experimental import pallas as pl
from jax.experimental.pallas import tpu as pltpu

NORM_EPS = 1e-8   # matches the module's NORM_EPS (not torch GroupNorm's 1e-5 default)


def _sum_tc(x):
    """Sum over (time, channel) axes of a (NB, T, H) array, keep the batch axis."""
    return jnp.sum(jnp.sum(x, axis=2, keepdims=True), axis=1, keepdims=True)


def _groupnorm_1group(x, gamma, beta):
    """GroupNorm(num_groups=1), per-sample stats, single pass, folded affine.

    x: (NB, T, H); gamma/beta: (1, H).
    """
    inv_n = 1.0 / (x.shape[1] * x.shape[2])
    mean = _sum_tc(x) * inv_n                       # (NB, 1, 1)
    var = _sum_tc(x * x) * inv_n - mean * mean      # biased variance, one pass
    scale = jax.lax.rsqrt(var + NORM_EPS) * gamma   # (NB, 1, H)
    shift = beta - mean * scale                     # (NB, 1, H)
    return x * scale + shift


def _block_kernel(kernel_size, dilation, padding,
                  alphas_ref,                        # (2,) f32 in SMEM
                  x_ref,                             # (NB, T, C_in)
                  w1_ref, b1_ref, g1_ref, be1_ref,
                  wd_ref, bd_ref, g2_ref, be2_ref,
                  wcat_ref, bcat_ref,                # fused skip|res projection
                  out_ref,                           # (NB, T, C_fused)
                  pad_scratch):                      # (NB, T + 2*pad, H) VMEM
    nb, t_len, c_in = x_ref.shape
    h = w1_ref.shape[1]
    c_fused = wcat_ref.shape[1]
    a1 = alphas_ref[0]
    a2 = alphas_ref[1]

    # --- pointwise convolution (1x1 conv == channel matmul on the MXU) ---
    x2d = x_ref[...].reshape(nb * t_len, c_in)
    y = jnp.dot(x2d, w1_ref[...], preferred_element_type=jnp.float32) + b1_ref[...]
    # --- first non-linearity (PReLU, shared scalar alpha from SMEM) ---
    y = jnp.where(y >= 0, y, a1 * y)
    # --- first normalization (GroupNorm, 1 group, per sample) ---
    y = _groupnorm_1group(y.reshape(nb, t_len, h), g1_ref[...], be1_ref[...])

    # --- depthwise convolution via zero-padded VMEM scratch + static slices ---
    # out[b, t, c] = sum_k y_padded[b, t + k*dilation, c] * wd[k, c]
    if padding > 0:
        halo = jnp.zeros((nb, padding, h), jnp.float32)
        pad_scratch[:, :padding, :] = halo
        pad_scratch[:, padding + t_len:, :] = halo
    pad_scratch[:, padding:padding + t_len, :] = y

    acc = jnp.zeros((nb, t_len, h), jnp.float32)
    for k in range(kernel_size):
        off = k * dilation                           # static slice start
        acc = acc + pad_scratch[:, off:off + t_len, :] * wd_ref[k]
    z = acc + bd_ref[...]

    # --- second non-linearity + second normalization ---
    z = jnp.where(z >= 0, z, a2 * z)
    z = _groupnorm_1group(z, g2_ref[...], be2_ref[...])

    # --- fused skip|residual pointwise projections (one lane-dense matmul) ---
    out = (jnp.dot(z.reshape(nb * t_len, h), wcat_ref[...],
                   preferred_element_type=jnp.float32) + bcat_ref[...])
    out_ref[...] = out.reshape(nb, t_len, c_fused)


def separable_conv1d_block(x, params, *, kernel_size, dilation, padding,
                           batch_block=1):
    """x: (N, T, C_in) float32. Returns (x_skip, x_res), both in NTC layout."""
    n, t, c_in = x.shape
    h = params["w1"].shape[1]
    c_sk = params["wsk"].shape[1]
    c_res = params["wres"].shape[1]

    t_out = t + 2 * padding - dilation * (kernel_size - 1)
    # TODO(synk): general (non-"same") depthwise output lengths not handled in-kernel.
    assert t_out == t, "kernel assumes 'same'-length depthwise conv output"

    nb = batch_block
    assert n % nb == 0, "batch_block must divide the batch size"

    # Fuse skip|residual projections; zero-pad output channels to a multiple of
    # 128 so the final store is lane-dense (unmasked vst) on all generations.
    c_cat = c_sk + c_res
    c_fused = ((c_cat + 127) // 128) * 128
    w_cat = jnp.pad(jnp.concatenate([params["wsk"], params["wres"]], axis=1),
                    ((0, 0), (0, c_fused - c_cat)))
    b_cat = jnp.pad(jnp.concatenate([params["bsk"], params["bres"]], axis=1),
                    ((0, 0), (0, c_fused - c_cat)))

    # PReLU alphas as SMEM scalars (no (1,1) VMEM tiles).
    alphas = jnp.concatenate(
        [params["a1"].reshape(-1), params["a2"].reshape(-1)]).astype(jnp.float32)

    full2d = lambda shape: pl.BlockSpec(shape, lambda b: (0, 0))
    t_padded = t + 2 * padding

    grid_spec = pltpu.PrefetchScalarGridSpec(
        num_scalar_prefetch=0,
        grid=(n // nb,),
        in_specs=[
            pl.BlockSpec(memory_space=pltpu.MemorySpace.SMEM),  # PReLU alphas
            pl.BlockSpec((nb, t, c_in), lambda b: (b, 0, 0)),   # x
            full2d((c_in, h)),                                  # w1
            full2d((1, h)),                                     # b1
            full2d((1, h)),                                     # gn1 gamma
            full2d((1, h)),                                     # gn1 beta
            full2d((kernel_size, h)),                           # depthwise w
            full2d((1, h)),                                     # depthwise b
            full2d((1, h)),                                     # gn2 gamma
            full2d((1, h)),                                     # gn2 beta
            full2d((h, c_fused)),                               # fused skip|res w
            full2d((1, c_fused)),                               # fused skip|res b
        ],
        out_specs=pl.BlockSpec((nb, t, c_fused), lambda b: (b, 0, 0)),
        scratch_shapes=[pltpu.VMEM((nb, t_padded, h), jnp.float32)],
    )

    # Rough per-step VMEM working set; only raise the scoped limit when needed.
    vmem_est = 4 * (nb * t_padded * h                    # depthwise scratch
                    + 3 * nb * t * h                     # y / z / acc live values
                    + 2 * nb * t * (c_in + c_fused)      # double-buffered in/out blocks
                    + 2 * (c_in * h + kernel_size * h + h * c_fused + 6 * h + c_fused))
    cp_kwargs = dict(dimension_semantics=("parallel",))
    if vmem_est > 30 * 1024 * 1024:
        # TODO(synk): at production Conv-TasNet scale (T ~ 4k-16k, H = 512) restructure
        # into a two-pass T-tiled kernel (partial GN sums over T tiles, then
        # normalize + depthwise with halo rows) so VMEM stays O(tile*H) and fits
        # v7x's 64 MiB while feeding both of its TensorCores.
        cp_kwargs["vmem_limit_bytes"] = min(int(vmem_est * 1.5), 100 * 1024 * 1024)

    kernel = functools.partial(_block_kernel, kernel_size, dilation, padding)
    out = pl.pallas_call(
        kernel,
        out_shape=jax.ShapeDtypeStruct((n, t, c_fused), jnp.float32),
        grid_spec=grid_spec,
        compiler_params=pltpu.CompilerParams(**cp_kwargs),
    )(alphas, x, params["w1"], params["b1"], params["g1"], params["be1"],
      params["wd"], params["bd"], params["g2"], params["be2"], w_cat, b_cat)

    return out[:, :, :c_sk], out[:, :, c_sk:c_cat]


def ref_forward(x, p, *, kernel_size, dilation, padding):
    """Pure-JAX reference of the PyTorch forward (NTC layout), two-pass GN."""
    y = jnp.einsum("ntc,ch->nth", x, p["w1"]) + p["b1"]
    y = jnp.where(y >= 0, y, p["a1"][0, 0] * y)
    mean = y.mean(axis=(1, 2), keepdims=True)
    var = ((y - mean) ** 2).mean(axis=(1, 2), keepdims=True)
    y = (y - mean) / jnp.sqrt(var + NORM_EPS) * p["g1"] + p["be1"]

    t = x.shape[1]
    yp = jnp.pad(y, ((0, 0), (padding, padding), (0, 0)))
    acc = jnp.zeros_like(y)
    for k in range(kernel_size):
        acc = acc + yp[:, k * dilation:k * dilation + t, :] * p["wd"][k]
    z = acc + p["bd"]
    z = jnp.where(z >= 0, z, p["a2"][0, 0] * z)
    mean = z.mean(axis=(1, 2), keepdims=True)
    var = ((z - mean) ** 2).mean(axis=(1, 2), keepdims=True)
    z = (z - mean) / jnp.sqrt(var + NORM_EPS) * p["g2"] + p["be2"]

    x_skip = jnp.einsum("nth,hk->ntk", z, p["wsk"]) + p["bsk"]
    x_res = jnp.einsum("nth,hk->ntk", z, p["wres"]) + p["bres"]
    return x_skip, x_res


if __name__ == "__main__":
    # Small shapes consistent with the module.
    N, T = 4, 16
    C_IN, HIDDEN, C_SKIP, C_RES = 4, 32, 8, 4
    KERNEL_SIZE, DILATION = 3, 2
    PADDING = DILATION * (KERNEL_SIZE - 1) // 2  # "same"-length, Conv-TasNet style

    key = jax.random.PRNGKey(0)
    ks = jax.random.split(key, 8)

    params = {
        # pointwise conv: PyTorch weight (H, C_in, 1) -> stored here as (C_in, H)
        "w1": jax.random.normal(ks[0], (C_IN, HIDDEN), jnp.float32) * 0.1,
        "b1": jax.random.normal(ks[1], (1, HIDDEN), jnp.float32) * 0.1,
        "a1": jnp.full((1, 1), 0.25, jnp.float32),          # PReLU default init
        "g1": jnp.ones((1, HIDDEN), jnp.float32),           # GroupNorm affine
        "be1": jnp.zeros((1, HIDDEN), jnp.float32),
        # depthwise conv: PyTorch weight (H, 1, K) -> stored here as (K, H)
        "wd": jax.random.normal(ks[2], (KERNEL_SIZE, HIDDEN), jnp.float32) * 0.1,
        "bd": jax.random.normal(ks[3], (1, HIDDEN), jnp.float32) * 0.1,
        "a2": jnp.full((1, 1), 0.25, jnp.float32),
        "g2": jnp.ones((1, HIDDEN), jnp.float32),
        "be2": jnp.zeros((1, HIDDEN), jnp.float32),
        "wsk": jax.random.normal(ks[4], (HIDDEN, C_SKIP), jnp.float32) * 0.1,
        "bsk": jax.random.normal(ks[5], (1, C_SKIP), jnp.float32) * 0.1,
        "wres": jax.random.normal(ks[6], (HIDDEN, C_RES), jnp.float32) * 0.1,
        "bres": jax.random.normal(ks[7], (1, C_RES), jnp.float32) * 0.1,
    }

    x = jax.random.normal(jax.random.PRNGKey(42), (N, T, C_IN), jnp.float32)

    x_skip, x_res = separable_conv1d_block(
        x, params, kernel_size=KERNEL_SIZE, dilation=DILATION, padding=PADDING,
        batch_block=2)
    jax.block_until_ready((x_skip, x_res))

    ref_skip, ref_res = ref_forward(
        x, params, kernel_size=KERNEL_SIZE, dilation=DILATION, padding=PADDING)

    assert x_skip.shape == (N, T, C_SKIP) and x_res.shape == (N, T, C_RES)
    assert jnp.allclose(x_skip, ref_skip, rtol=1e-4, atol=1e-5)
    assert jnp.allclose(x_res, ref_res, rtol=1e-4, atol=1e-5)

    print("KERNEL_OK")
</pallas_src>

<mosaic_0001>
module attributes {stable_mosaic.version = 11 : i64} {
  func.func @_block_kernel(%arg0: i32, %arg1: memref<2xf32, #tpu.memory_space<smem>>, %arg2: memref<2x16x4xf32, #tpu.memory_space<vmem>>, %arg3: memref<4x32xf32, #tpu.memory_space<vmem>>, %arg4: memref<1x32xf32, #tpu.memory_space<vmem>>, %arg5: memref<1x32xf32, #tpu.memory_space<vmem>>, %arg6: memref<1x32xf32, #tpu.memory_space<vmem>>, %arg7: memref<3x32xf32, #tpu.memory_space<vmem>>, %arg8: memref<1x32xf32, #tpu.memory_space<vmem>>, %arg9: memref<1x32xf32, #tpu.memory_space<vmem>>, %arg10: memref<1x32xf32, #tpu.memory_space<vmem>>, %arg11: memref<32x128xf32, #tpu.memory_space<vmem>>, %arg12: memref<1x128xf32, #tpu.memory_space<vmem>>, %arg13: memref<2x16x128xf32, #tpu.memory_space<vmem>>, %arg14: memref<2x20x32xf32, #tpu.memory_space<vmem>>) attributes {dimension_semantics = [#tpu.dimension_semantics<parallel>], iteration_bounds = array<i64: 2>, scalar_prefetch = 0 : i64, scratch_operands = 1 : i64, tpu.core_type = #tpu.core_type<tc>, window_params = [{transform_indices = @transform_0, window_bounds = array<i64: 2>}, {transform_indices = @transform_1, window_bounds = array<i64: 2, 16, 4>}, {pipeline_mode = #tpu.pipeline_mode<synchronous>, transform_indices = @transform_2, window_bounds = array<i64: 4, 32>}, {pipeline_mode = #tpu.pipeline_mode<synchronous>, transform_indices = @transform_3, window_bounds = array<i64: 1, 32>}, {pipeline_mode = #tpu.pipeline_mode<synchronous>, transform_indices = @transform_4, window_bounds = array<i64: 1, 32>}, {pipeline_mode = #tpu.pipeline_mode<synchronous>, transform_indices = @transform_5, window_bounds = array<i64: 1, 32>}, {pipeline_mode = #tpu.pipeline_mode<synchronous>, transform_indices = @transform_6, window_bounds = array<i64: 3, 32>}, {pipeline_mode = #tpu.pipeline_mode<synchronous>, transform_indices = @transform_7, window_bounds = array<i64: 1, 32>}, {pipeline_mode = #tpu.pipeline_mode<synchronous>, transform_indices = @transform_8, window_bounds = array<i64: 1, 32>}, {pipeline_mode = #tpu.pipeline_mode<synchronous>, transform_indices = @transform_9, window_bounds = array<i64: 1, 32>}, {pipeline_mode = #tpu.pipeline_mode<synchronous>, transform_indices = @transform_10, window_bounds = array<i64: 32, 128>}, {pipeline_mode = #tpu.pipeline_mode<synchronous>, transform_indices = @transform_11, window_bounds = array<i64: 1, 128>}, {transform_indices = @transform_12, window_bounds = array<i64: 2, 16, 128>}]} {
    %c0 = arith.constant 0 : index
    %0 = memref.load %arg1[%c0] : memref<2xf32, #tpu.memory_space<smem>>
    %c1 = arith.constant 1 : index
    %1 = memref.load %arg1[%c1] : memref<2xf32, #tpu.memory_space<smem>>
    %c0_0 = arith.constant 0 : index
    %c0_1 = arith.constant 0 : index
    %c0_2 = arith.constant 0 : index
    %2 = vector.load %arg2[%c0_0, %c0_1, %c0_2] : memref<2x16x4xf32, #tpu.memory_space<vmem>>, vector<2x16x4xf32>
    %3 = vector.shape_cast %2 : vector<2x16x4xf32> to vector<32x4xf32>
    %c0_3 = arith.constant 0 : index
    %c0_4 = arith.constant 0 : index
    %4 = vector.load %arg3[%c0_3, %c0_4] : memref<4x32xf32, #tpu.memory_space<vmem>>, vector<4x32xf32>
    %cst = arith.constant dense<0.000000e+00> : vector<32x32xf32>
    %5 = tpu.matmul %3, %4, %cst {dimension_numbers = #tpu.dot_dimension_numbers<[1], [0], [0], [1], [0, 0, 1, 1], [], []>} : vector<32x4xf32>, vector<4x32xf32>, vector<32x32xf32> -> vector<32x32xf32>
    %c0_5 = arith.constant 0 : index
    %c0_6 = arith.constant 0 : index
    %6 = vector.load %arg4[%c0_5, %c0_6] : memref<1x32xf32, #tpu.memory_space<vmem>>, vector<1x32xf32>
    %7 = vector.broadcast %6 : vector<1x32xf32> to vector<32x32xf32>
    %8 = arith.addf %5, %7 : vector<32x32xf32>
    %cst_7 = arith.constant 0.000000e+00 : f32
    %9 = vector.broadcast %cst_7 : f32 to vector<32x32xf32>
    %10 = arith.cmpf oge, %8, %9 : vector<32x32xf32>
    %11 = vector.broadcast %0 : f32 to vector<32x32xf32>
    %12 = arith.mulf %11, %8 : vector<32x32xf32>
    %13 = arith.select %10, %8, %12 : vector<32x32xi1>, vector<32x32xf32>
    %14 = vector.shape_cast %13 : vector<32x32xf32> to vector<2x16x32xf32>
    %c0_8 = arith.constant 0 : index
    %c0_9 = arith.constant 0 : index
    %15 = vector.load %arg5[%c0_8, %c0_9] : memref<1x32xf32, #tpu.memory_space<vmem>>, vector<1x32xf32>
    %c0_10 = arith.constant 0 : index
    %c0_11 = arith.constant 0 : index
    %16 = vector.load %arg6[%c0_10, %c0_11] : memref<1x32xf32, #tpu.memory_space<vmem>>, vector<1x32xf32>
    %cst_12 = arith.constant dense<0.000000e+00> : vector<2x16xf32>
    %17 = vector.multi_reduction <add>, %14, %cst_12 [2] : vector<2x16x32xf32> to vector<2x16xf32>
    %18 = vector.shape_cast %17 : vector<2x16xf32> to vector<2x16x1xf32>
    %cst_13 = arith.constant dense<0.000000e+00> : vector<2x1xf32>
    %19 = vector.multi_reduction <add>, %18, %cst_13 [1] : vector<2x16x1xf32> to vector<2x1xf32>
    %20 = vector.shape_cast %19 : vector<2x1xf32> to vector<2x1x1xf32>
    %cst_14 = arith.constant 0.001953125 : f32
    %21 = vector.broadcast %cst_14 : f32 to vector<2x1x1xf32>
    %22 = arith.mulf %20, %21 : vector<2x1x1xf32>
    %23 = arith.mulf %14, %14 : vector<2x16x32xf32>
    %cst_15 = arith.constant dense<0.000000e+00> : vector<2x16xf32>
    %24 = vector.multi_reduction <add>, %23, %cst_15 [2] : vector<2x16x32xf32> to vector<2x16xf32>
    %25 = vector.shape_cast %24 : vector<2x16xf32> to vector<2x16x1xf32>
    %cst_16 = arith.constant dense<0.000000e+00> : vector<2x1xf32>
    %26 = vector.multi_reduction <add>, %25, %cst_16 [1] : vector<2x16x1xf32> to vector<2x1xf32>
    %27 = vector.shape_cast %26 : vector<2x1xf32> to vector<2x1x1xf32>
    %cst_17 = arith.constant 0.001953125 : f32
    %28 = vector.broadcast %cst_17 : f32 to vector<2x1x1xf32>
    %29 = arith.mulf %27, %28 : vector<2x1x1xf32>
    %30 = arith.mulf %22, %22 : vector<2x1x1xf32>
    %31 = arith.subf %29, %30 : vector<2x1x1xf32>
    %cst_18 = arith.constant 9.99999993E-9 : f32
    %32 = vector.broadcast %cst_18 : f32 to vector<2x1x1xf32>
    %33 = arith.addf %31, %32 : vector<2x1x1xf32>
    %34 = math.rsqrt %33 : vector<2x1x1xf32>
    %35 = vector.shape_cast %15 : vector<1x32xf32> to vector<1x1x32xf32>
    %36 = vector.broadcast %34 : vector<2x1x1xf32> to vector<2x1x32xf32>
    %37 = vector.broadcast %35 : vector<1x1x32xf32> to vector<2x1x32xf32>
    %38 = arith.mulf %36, %37 : vector<2x1x32xf32>
    %39 = vector.broadcast %22 : vector<2x1x1xf32> to vector<2x1x32xf32>
    %40 = arith.mulf %39, %38 : vector<2x1x32xf32>
    %41 = vector.shape_cast %16 : vector<1x32xf32> to vector<1x1x32xf32>
    %42 = vector.broadcast %41 : vector<1x1x32xf32> to vector<2x1x32xf32>
    %43 = arith.subf %42, %40 : vector<2x1x32xf32>
    %44 = vector.broadcast %38 : vector<2x1x32xf32> to vector<2x16x32xf32>
    %45 = arith.mulf %14, %44 : vector<2x16x32xf32>
    %46 = vector.broadcast %43 : vector<2x1x32xf32> to vector<2x16x32xf32>
    %47 = arith.addf %45, %46 : vector<2x16x32xf32>
    %cst_19 = arith.constant 0.000000e+00 : f32
    %48 = vector.broadcast %cst_19 : f32 to vector<2x2x32xf32>
    %c0_20 = arith.constant 0 : index
    %c0_21 = arith.constant 0 : index
    %c0_22 = arith.constant 0 : index
    %49 = vector.load %arg14[%c0_20, %c0_21, %c0_22] : memref<2x20x32xf32, #tpu.memory_space<vmem>>, vector<2x2x32xf32>
    tpu.vector_store %arg14[%c0_20, %c0_21, %c0_22], %48 {strides = array<i32>} : memref<2x20x32xf32, #tpu.memory_space<vmem>>, vector<2x2x32xf32>,
    %c0_23 = arith.constant 0 : index
    %c18 = arith.constant 18 : index
    %c0_24 = arith.constant 0 : index
    %50 = vector.load %arg14[%c0_23, %c18, %c0_24] : memref<2x20x32xf32, #tpu.memory_space<vmem>>, vector<2x2x32xf32>
    tpu.vector_store %arg14[%c0_23, %c18, %c0_24], %48 {strides = array<i32>} : memref<2x20x32xf32, #tpu.memory_space<vmem>>, vector<2x2x32xf32>,
    %c0_25 = arith.constant 0 : index
    %c2 = arith.constant 2 : index
    %c0_26 = arith.constant 0 : index
    %51 = vector.load %arg14[%c0_25, %c2, %c0_26] : memref<2x20x32xf32, #tpu.memory_space<vmem>>, vector<2x16x32xf32>
    tpu.vector_store %arg14[%c0_25, %c2, %c0_26], %47 {strides = array<i32>} : memref<2x20x32xf32, #tpu.memory_space<vmem>>, vector<2x16x32xf32>,
    %cst_27 = arith.constant 0.000000e+00 : f32
    %52 = vector.broadcast %cst_27 : f32 to vector<2x16x32xf32>
    %c0_28 = arith.constant 0 : index
    %c0_29 = arith.constant 0 : index
    %c0_30 = arith.constant 0 : index
    %53 = vector.load %arg14[%c0_28, %c0_29, %c0_30] : memref<2x20x32xf32, #tpu.memory_space<vmem>>, vector<2x16x32xf32>
    %c0_31 = arith.constant 0 : index
    %c0_32 = arith.constant 0 : index
    %54 = vector.load %arg7[%c0_31, %c0_32] : memref<3x32xf32, #tpu.memory_space<vmem>>, vector<1x32xf32>
    %55 = vector.shape_cast %54 : vector<1x32xf32> to vector<32xf32>
    %56 = vector.shape_cast %55 : vector<32xf32> to vector<1x1x32xf32>
    %57 = vector.broadcast %56 : vector<1x1x32xf32> to vector<2x16x32xf32>
    %58 = arith.mulf %53, %57 : vector<2x16x32xf32>
    %59 = arith.addf %52, %58 : vector<2x16x32xf32>
    %c0_33 = arith.constant 0 : index
    %c2_34 = arith.constant 2 : index
    %c0_35 = arith.constant 0 : index
    %60 = vector.load %arg14[%c0_33, %c2_34, %c0_35] : memref<2x20x32xf32, #tpu.memory_space<vmem>>, vector<2x16x32xf32>
    %c1_36 = arith.constant 1 : index
    %c0_37 = arith.constant 0 : index
    %61 = vector.load %arg7[%c1_36, %c0_37] : memref<3x32xf32, #tpu.memory_space<vmem>>, vector<1x32xf32>
    %62 = vector.shape_cast %61 : vector<1x32xf32> to vector<32xf32>
    %63 = vector.shape_cast %62 : vector<32xf32> to vector<1x1x32xf32>
    %64 = vector.broadcast %63 : vector<1x1x32xf32> to vector<2x16x32xf32>
    %65 = arith.mulf %60, %64 : vector<2x16x32xf32>
    %66 = arith.addf %59, %65 : vector<2x16x32xf32>
    %c0_38 = arith.constant 0 : index
    %c4 = arith.constant 4 : index
    %c0_39 = arith.constant 0 : index
    %67 = vector.load %arg14[%c0_38, %c4, %c0_39] : memref<2x20x32xf32, #tpu.memory_space<vmem>>, vector<2x16x32xf32>
    %c2_40 = arith.constant 2 : index
    %c0_41 = arith.constant 0 : index
    %68 = vector.load %arg7[%c2_40, %c0_41] : memref<3x32xf32, #tpu.memory_space<vmem>>, vector<1x32xf32>
    %69 = vector.shape_cast %68 : vector<1x32xf32> to vector<32xf32>
    %70 = vector.shape_cast %69 : vector<32xf32> to vector<1x1x32xf32>
    %71 = vector.broadcast %70 : vector<1x1x32xf32> to vector<2x16x32xf32>
    %72 = arith.mulf %67, %71 : vector<2x16x32xf32>
    %73 = arith.addf %66, %72 : vector<2x16x32xf32>
    %c0_42 = arith.constant 0 : index
    %c0_43 = arith.constant 0 : index
    %74 = vector.load %arg8[%c0_42, %c0_43] : memref<1x32xf32, #tpu.memory_space<vmem>>, vector<1x32xf32>
    %75 = vector.shape_cast %74 : vector<1x32xf32> to vector<1x1x32xf32>
    %76 = vector.broadcast %75 : vector<1x1x32xf32> to vector<2x16x32xf32>
    %77 = arith.addf %73, %76 : vector<2x16x32xf32>
    %cst_44 = arith.constant 0.000000e+00 : f32
    %78 = vector.broadcast %cst_44 : f32 to vector<2x16x32xf32>
    %79 = arith.cmpf oge, %77, %78 : vector<2x16x32xf32>
    %80 = vector.broadcast %1 : f32 to vector<2x16x32xf32>
    %81 = arith.mulf %80, %77 : vector<2x16x32xf32>
    %82 = arith.select %79, %77, %81 : vector<2x16x32xi1>, vector<2x16x32xf32>
    %c0_45 = arith.constant 0 : index
    %c0_46 = arith.constant 0 : index
    %83 = vector.load %arg9[%c0_45, %c0_46] : memref<1x32xf32, #tpu.memory_space<vmem>>, vector<1x32xf32>
    %c0_47 = arith.constant 0 : index
    %c0_48 = arith.constant 0 : index
    %84 = vector.load %arg10[%c0_47, %c0_48] : memref<1x32xf32, #tpu.memory_space<vmem>>, vector<1x32xf32>
    %cst_49 = arith.constant dense<0.000000e+00> : vector<2x16xf32>
    %85 = vector.multi_reduction <add>, %82, %cst_49 [2] : vector<2x16x32xf32> to vector<2x16xf32>
    %86 = vector.shape_cast %85 : vector<2x16xf32> to vector<2x16x1xf32>
    %cst_50 = arith.constant dense<0.000000e+00> : vector<2x1xf32>
    %87 = vector.multi_reduction <add>, %86, %cst_50 [1] : vector<2x16x1xf32> to vector<2x1xf32>
    %88 = vector.shape_cast %87 : vector<2x1xf32> to vector<2x1x1xf32>
    %cst_51 = arith.constant 0.001953125 : f32
    %89 = vector.broadcast %cst_51 : f32 to vector<2x1x1xf32>
    %90 = arith.mulf %88, %89 : vector<2x1x1xf32>
    %91 = arith.mulf %82, %82 : vector<2x16x32xf32>
    %cst_52 = arith.constant dense<0.000000e+00> : vector<2x16xf32>
    %92 = vector.multi_reduction <add>, %91, %cst_52 [2] : vector<2x16x32xf32> to vector<2x16xf32>
    %93 = vector.shape_cast %92 : vector<2x16xf32> to vector<2x16x1xf32>
    %cst_53 = arith.constant dense<0.000000e+00> : vector<2x1xf32>
    %94 = vector.multi_reduction <add>, %93, %cst_53 [1] : vector<2x16x1xf32> to vector<2x1xf32>
    %95 = vector.shape_cast %94 : vector<2x1xf32> to vector<2x1x1xf32>
    %cst_54 = arith.constant 0.001953125 : f32
    %96 = vector.broadcast %cst_54 : f32 to vector<2x1x1xf32>
    %97 = arith.mulf %95, %96 : vector<2x1x1xf32>
    %98 = arith.mulf %90, %90 : vector<2x1x1xf32>
    %99 = arith.subf %97, %98 : vector<2x1x1xf32>
    %cst_55 = arith.constant 9.99999993E-9 : f32
    %100 = vector.broadcast %cst_55 : f32 to vector<2x1x1xf32>
    %101 = arith.addf %99, %100 : vector<2x1x1xf32>
    %102 = math.rsqrt %101 : vector<2x1x1xf32>
    %103 = vector.shape_cast %83 : vector<1x32xf32> to vector<1x1x32xf32>
    %104 = vector.broadcast %102 : vector<2x1x1xf32> to vector<2x1x32xf32>
    %105 = vector.broadcast %103 : vector<1x1x32xf32> to vector<2x1x32xf32>
    %106 = arith.mulf %104, %105 : vector<2x1x32xf32>
    %107 = vector.broadcast %90 : vector<2x1x1xf32> to vector<2x1x32xf32>
    %108 = arith.mulf %107, %106 : vector<2x1x32xf32>
    %109 = vector.shape_cast %84 : vector<1x32xf32> to vector<1x1x32xf32>
    %110 = vector.broadcast %109 : vector<1x1x32xf32> to vector<2x1x32xf32>
    %111 = arith.subf %110, %108 : vector<2x1x32xf32>
    %112 = vector.broadcast %106 : vector<2x1x32xf32> to vector<2x16x32xf32>
    %113 = arith.mulf %82, %112 : vector<2x16x32xf32>
    %114 = vector.broadcast %111 : vector<2x1x32xf32> to vector<2x16x32xf32>
    %115 = arith.addf %113, %114 : vector<2x16x32xf32>
    %116 = vector.shape_cast %115 : vector<2x16x32xf32> to vector<32x32xf32>
    %c0_56 = arith.constant 0 : index
    %c0_57 = arith.constant 0 : index
    %117 = vector.load %arg11[%c0_56, %c0_57] : memref<32x128xf32, #tpu.memory_space<vmem>>, vector<32x128xf32>
    %cst_58 = arith.constant dense<0.000000e+00> : vector<32x128xf32>
    %118 = tpu.matmul %116, %117, %cst_58 {dimension_numbers = #tpu.dot_dimension_numbers<[1], [0], [0], [1], [0, 0, 1, 1], [], []>} : vector<32x32xf32>, vector<32x128xf32>, vector<32x128xf32> -> vector<32x128xf32>
    %c0_59 = arith.constant 0 : index
    %c0_60 = arith.constant 0 : index
    %119 = vector.load %arg12[%c0_59, %c0_60] : memref<1x128xf32, #tpu.memory_space<vmem>>, vector<1x128xf32>
    %120 = vector.broadcast %119 : vector<1x128xf32> to vector<32x128xf32>
    %121 = arith.addf %118, %120 : vector<32x128xf32>
    %122 = vector.shape_cast %121 : vector<32x128xf32> to vector<2x16x128xf32>
    %c0_61 = arith.constant 0 : index
    %c0_62 = arith.constant 0 : index
    %c0_63 = arith.constant 0 : index
    %123 = vector.load %arg13[%c0_61, %c0_62, %c0_63] : memref<2x16x128xf32, #tpu.memory_space<vmem>>, vector<2x16x128xf32>
    tpu.vector_store %arg13[%c0_61, %c0_62, %c0_63], %122 {strides = array<i32>} : memref<2x16x128xf32, #tpu.memory_space<vmem>>, vector<2x16x128xf32>,
    return
  }
  func.func @transform_0(%arg0: i32) -> i32 {
    %c0_i32 = arith.constant 0 : i32
    %c0_i32_0 = arith.constant 0 : i32
    return %c0_i32 : i32
  }
  func.func @transform_1(%arg0: i32) -> (i32, i32, i32) {
    %c0_i32 = arith.constant 0 : i32
    %c0_i32_0 = arith.constant 0 : i32
    %c0_i32_1 = arith.constant 0 : i32
    return %arg0, %c0_i32, %c0_i32_0 : i32, i32, i32
  }
  func.func @transform_2(%arg0: i32) -> (i32, i32) {
    %c0_i32 = arith.constant 0 : i32
    %c0_i32_0 = arith.constant 0 : i32
    %c0_i32_1 = arith.constant 0 : i32
    return %c0_i32, %c0_i32_0 : i32, i32
  }
  func.func @transform_3(%arg0: i32) -> (i32, i32) {
    %c0_i32 = arith.constant 0 : i32
    %c0_i32_0 = arith.constant 0 : i32
    %c0_i32_1 = arith.constant 0 : i32
    return %c0_i32, %c0_i32_0 : i32, i32
  }
  func.func @transform_4(%arg0: i32) -> (i32, i32) {
    %c0_i32 = arith.constant 0 : i32
    %c0_i32_0 = arith.constant 0 : i32
    %c0_i32_1 = arith.constant 0 : i32
    return %c0_i32, %c0_i32_0 : i32, i32
  }
  func.func @transform_5(%arg0: i32) -> (i32, i32) {
    %c0_i32 = arith.constant 0 : i32
    %c0_i32_0 = arith.constant 0 : i32
    %c0_i32_1 = arith.constant 0 : i32
    return %c0_i32, %c0_i32_0 : i32, i32
  }
  func.func @transform_6(%arg0: i32) -> (i32, i32) {
    %c0_i32 = arith.constant 0 : i32
    %c0_i32_0 = arith.constant 0 : i32
    %c0_i32_1 = arith.constant 0 : i32
    return %c0_i32, %c0_i32_0 : i32, i32
  }
  func.func @transform_7(%arg0: i32) -> (i32, i32) {
    %c0_i32 = arith.constant 0 : i32
    %c0_i32_0 = arith.constant 0 : i32
    %c0_i32_1 = arith.constant 0 : i32
    return %c0_i32, %c0_i32_0 : i32, i32
  }
  func.func @transform_8(%arg0: i32) -> (i32, i32) {
    %c0_i32 = arith.constant 0 : i32
    %c0_i32_0 = arith.constant 0 : i32
    %c0_i32_1 = arith.constant 0 : i32
    return %c0_i32, %c0_i32_0 : i32, i32
  }
  func.func @transform_9(%arg0: i32) -> (i32, i32) {
    %c0_i32 = arith.constant 0 : i32
    %c0_i32_0 = arith.constant 0 : i32
    %c0_i32_1 = arith.constant 0 : i32
    return %c0_i32, %c0_i32_0 : i32, i32
  }
  func.func @transform_10(%arg0: i32) -> (i32, i32) {
    %c0_i32 = arith.constant 0 : i32
    %c0_i32_0 = arith.constant 0 : i32
    %c0_i32_1 = arith.constant 0 : i32
    return %c0_i32, %c0_i32_0 : i32, i32
  }
  func.func @transform_11(%arg0: i32) -> (i32, i32) {
    %c0_i32 = arith.constant 0 : i32
    %c0_i32_0 = arith.constant 0 : i32
    %c0_i32_1 = arith.constant 0 : i32
    return %c0_i32, %c0_i32_0 : i32, i32
  }
  func.func @transform_12(%arg0: i32) -> (i32, i32, i32) {
    %c0_i32 = arith.constant 0 : i32
    %c0_i32_0 = arith.constant 0 : i32
    %c0_i32_1 = arith.constant 0 : i32
    return %arg0, %c0_i32, %c0_i32_0 : i32, i32, i32
  }
}

</mosaic_0001>

<bundles_post_ra>
// kernel: tpu_custom_call.1
= control target key start
LH: loop header
LB: loop body
LE: loop exit
PB: predicated region body
PF: predicated region fallthrough
CT: control target
= control target key end

     0   :  { %s1405_s0 = inlined_call_operand.vmem [shape: f32[2], index: 0, kind: input, shape index: {}]   ;;  %s1406_s1 = inlined_call_operand.vmem [shape: f32[4,16,4], index: 1, kind: input, shape index: {}]   ;;  %s1407_s2 = inlined_call_operand.vmem [shape: f32[4,32], index: 2, kind: input, shape index: {}]   ;;  %s1408_s3 = inlined_call_operand.vmem [shape: f32[1,32], index: 3, kind: input, shape index: {}]   ;;  %s1409_s4 = inlined_call_operand.vmem [shape: f32[1,32], index: 4, kind: input, shape index: {}]   ;;  %s1410_s5 = inlined_call_operand.vmem [shape: f32[1,32], index: 5, kind: input, shape index: {}]   ;;  %s1411_s6 = inlined_call_operand.vmem [shape: f32[3,32], index: 6, kind: input, shape index: {}]   ;;  %s1412_s7 = inlined_call_operand.vmem [shape: f32[1,32], index: 7, kind: input, shape index: {}]   ;;  %s1413_s8 = inlined_call_operand.vmem [shape: f32[1,32], index: 8, kind: input, shape index: {}]   ;;  %s1414_s9 = inlined_call_operand.vmem [shape: f32[1,32], index: 9, kind: input, shape index: {}]   ;;  %s1415_s10 = inlined_call_operand.vmem [shape: f32[32,128], index: 10, kind: input, shape index: {}]   ;;  %s1416_s11 = inlined_call_operand.vmem [shape: f32[1,128], index: 11, kind: input, shape index: {}]   ;;  %s1417_s12 = inlined_call_operand.hbm [shape: f32[4,16,128], index: 12, kind: output, shape index: {}]  }
   0x1   :  { %1418 = sst [smem:[#allocation9_spill]] %s1405_s0 }
   0x2   :  { %1419 = sst [smem:[#allocation10_spill]] %s1406_s1 }
   0x3   :  { %17 = vsyncpa [#allocation5], 0 }
   0x4   :  { %18 = vsyncpa [#allocation4], 0 }
   0x5   :  { %20 = vsyncpa [#allocation4 + $0x1], 0  ;;  %s1200_s21 = smov 0   ;;  %s1202_s22 = smov 0  }
   0x6   :  { %s1204_s23 = smov 0   ;;  %s1206_s24 = smov 0  }
   0x7 LB: > { %s1221_s25 = sadd.s32 4294967295, %s1129_s24   ;;  %s947_s26 = sadd.s32 4294967294, %s1129_s24   ;;  %s1129_s24 = sphi %s1206_s24, %s1427_s24   ;;  %s1125_s23 = sphi %s1204_s23, %s1426_s23   ;;  %s1121_s22 = sphi %s1202_s22, %s1425_s22   ;;  %s1117_s21 = sphi %s1200_s21, %s1424_s21  }
   0x8   : > { %s1225_s27 = sadd.s32 1, %s1129_s24   ;;  %s290_s28 = sadd.s32 1, %s1125_s23 }
   0x9   : > { %s287_s29 = ssub.s32 %s1129_s24, %s1225_s27  ;;  %p300_p0 = scmp.ne.s32.totalorder %s1125_s23, %s1121_s22 }
   0xa   : > { %p288_p1 = scmp.eq.s32.totalorder %s287_s29, 0  ;;  %p301_p2 = scmp.eq.s32.totalorder %s1221_s25, 1 }
   0xb   : > { %p306_p3 = scmp.ne.s32.totalorder %s1121_s22, %s1117_s21  ;;  %p307_p4 = scmp.eq.s32.totalorder %s947_s26, 1 }
   0xc   : > { %s1236_s30 = scalar_select %p288_p1, %s1125_s23, %s290_s28  }
   0xd   : > { %p1238_p5 = por %p301_p2, %p300_p0  ;;  %p1242_p6 = por %p307_p4, %p306_p3 }
   0xe   : > { %p948_p7 = scmp.ge.s32.totalorder %s1129_s24, 1  ;;  %p314_p8 = scmp.lt.s32.totalorder %s1129_s24, 3 }
   0xf   : > { %p995_p9 = scmp.eq.s32.totalorder %s1221_s25, 0  ;;  %s1422_s0 = sld [smem:[#allocation9_spill]] }
  0x10   : > { %p315_p10 = pnand %p948_p7, %p314_p8  ;;  %s1131_s18 = smov [#allocation3]  }
  0x12   : > { %p987_p11 = pneg %p315_p10  ;;  %379 = sbr.rel (%p315_p10) target bundleno = 705 (0x2c1), region = 68 }
  0x14   : > { %p988_p12 = pnand %p995_p9, %p987_p11 }
  0x15   : > { %s326_s17 = sshll.u32 %s1422_s0, 4  ;;  %s327_s17 = int_to_ptr.vmem [resolvable:$true] %s326_s17 }
  0x16   : > { %990 = dma.vmem_to_smem (!%p988_p12), %s327_s17, 16, %s1131_s18, [#allocation5]  }
  0x17   : > { %1108 = dma.done.wait (%p995_p9), [#allocation5], 16  }
  0x18   : > { %1110 = vsyncadd (%p995_p9), [#allocation5], 4294967280 }
  0x19   : > { %386 = sfence }
  0x1a   : > { %v438_v0 = vld [vmem:[%s1407_s2] sm:$0xf]  ;;  %vm456_vm0 = vcmask 1043456   ;;  %s954_s26 = sshll.u32 %s1221_s25, 1  ;;  %vm443_vm1 = vcmask 31744   ;;  %s1423_s1 = sld [smem:[#allocation10_spill]] }
  0x1b   : > { %958 = vmatpush.msk.msra.mxu0 %vm456_vm0, %v438_v0  ;;  %976 = vmatpush.msk.msra.mxu3 %vm456_vm0, %v438_v0  ;;  %p425_p13 = scmp.lt.s32.totalorder %s954_s26, 3  ;;  %s432_s17 = sld [smem:[#allocation3]]  ;;  %v1034_v5 = vld [vmem:[%s1408_s3] ss:$0 sm:$0xff]  ;;  %vm504_vm3 = vcmask 261120   ;;  %vm617_vm7 = vcmask 254976  }
  0x1c   : > { %s957_s19 = sld [smem:[#allocation3 + $0x1]]  ;;  %s421_s18 = sand.u32 1, %s1121_s22  }
  0x1d   : > { %s1429_s26 = smov (!%p425_p13, %s954_s26), 3  ;;  %s857_s20 = scalar_lea.sflag [#allocation4], %s421_s18 }
  0x1e   : > { %s973_s28 = sshll.u32 %s1429_s26, 4  ;;  %s1083_s15 = scalar_lea.hbm %s1417_s12, 64 }
  0x20   : > { %s429_s16 = scalar_lea.vmem %s1423_s1, %s973_s28  ;;  %s975_s28 = sshll.u32 %s1221_s25, 5 }
  0x21   : > { %v434_v1 = vld [vmem:[%s429_s16] sm:$0xff]  ;;  %v435_v2 = vld [vmem:[%s429_s16 + $0x8] sm:$0xff]  ;;  %v436_v3 = vld [vmem:[%s429_s16 + $0x10] sm:$0xff]  ;;  %v493_v7 = vstv %s432_s17  ;;  %s869_s17 = scalar_lea.hbm %s1417_s12, %s975_s28 }
  0x22   : > { %959 = vmatmul.msk.f32.vlgmr.msra.gmra.mxu0 %vm443_vm1, %v434_v1  ;;  %960 = vmatmul.msk.f32.vlgmr.msra.gmra.mxu3 %vm443_vm1, %v435_v2  ;;  %v437_v4 = vld [vmem:[%s429_s16 + $0x18] sm:$0xff]  ;;  %s872_s1 = sshll.u32 %s869_s17, 4  ;;  %s873_s1 = int_to_ptr.hbm [resolvable:$true] %s872_s1 }
  0x23   : > { %s1077_s25 = sshra.s32 %s873_s1, 4  ;;  %s1078_s25 = int_to_ptr.hbm [resolvable:$true] %s1077_s25 }
  0x24   : > { %p1084_p3 = scmp.lt.s32.totalorder %s1078_s25, %s1417_s12 }
  0x2a   : > { %961 = vmatmul.msk.f32.gmra.mxu3 %vm443_vm1, %v436_v3 }
  0x32   : > { %962 = vmatmul.msk.f32.gmra.mxu3 %vm443_vm1, %v437_v4 }
  0x9f   : > { %v477_v6 = vpop.f32.mrf.mxu0 }
  0xa0   : > { %v478_v8 = vadd.f32 %v1034_v5, %v477_v6 }
  0xa2   : > { %v494_v9 = vmul.f32 %v493_v7, %v478_v8  ;;  %vm489_vm2 = vcmp.ge.f32.partialorder %v478_v8, 0.0 }
  0xa4   : > { %v1262_v10 = vsel %vm489_vm2, %v478_v8, %v494_v9  ;;  %v1132_v9 = vmov 0.0  }
  0xa5   : > { %v480_v11 = vpop.f32.mrf.mxu3  ;;  %v505_v12 = vsel %vm504_vm3, %v1262_v10, 0.0  ;;  %v533_v31 = vmul.f32 %v1262_v10, %v1262_v10  ;;  %619 = vst.msk [vmem:[#allocation2 + $0x18] sm:$0x3] %vm617_vm7, %v1132_v9 }
  0xa6   : > { %v481_v13 = vadd.f32 %v1034_v5, %v480_v11  ;;  %506 = vadd.xlane.f32.xlu2 %v505_v12  ;;  %618 = vst.msk [vmem:[#allocation2] sm:$0x3] %vm617_vm7, %v1132_v9 }
  0xa7   : > { %v537_v33 = vsel %vm504_vm3, %v533_v31, 0.0  ;;  %620 = vst.msk [vmem:[#allocation2 + $0x12] sm:$0x3] %vm617_vm7, %v1132_v9 }
  0xa8   : > { %v495_v14 = vmul.f32 %v493_v7, %v481_v13  ;;  %vm490_vm4 = vcmp.ge.f32.partialorder %v481_v13, 0.0  ;;  %621 = vst.msk [vmem:[#allocation2 + $0x2a] sm:$0x3] %vm617_vm7, %v1132_v9 }
  0xaa   : > { %v1266_v15 = vsel %vm490_vm4, %v481_v13, %v495_v14 }
  0xab   : > { %v508_v17 = vsel %vm504_vm3, %v1266_v15, 0.0  ;;  %v534_v32 = vmul.f32 %v1266_v15, %v1266_v15 }
  0xad   : > { %v483_v16 = vpop.f32.mrf.mxu3  ;;  %v540_v34 = vsel %vm504_vm3, %v534_v32, 0.0 }
  0xae   : > { %v484_v18 = vadd.f32 %v1034_v5, %v483_v16  ;;  %509 = vadd.xlane.f32.xlu2 %v508_v17 }
  0xb0   : > { %v496_v19 = vmul.f32 %v493_v7, %v484_v18  ;;  %vm491_vm5 = vcmp.ge.f32.partialorder %v484_v18, 0.0 }
  0xb2   : > { %v1270_v20 = vsel %vm491_vm5, %v484_v18, %v496_v19 }
  0xb3   : > { %v511_v21 = vsel %vm504_vm3, %v1270_v20, 0.0  ;;  %v535_v22 = vmul.f32 %v1270_v20, %v1270_v20 }
  0xb4   : > { %512 = vadd.xlane.f32.xlu0 %v511_v21 }
  0xb5   : > { %v486_v23 = vpop.f32.mrf.mxu3  ;;  %v543_v24 = vsel %vm504_vm3, %v535_v22, 0.0 }
  0xb6   : > { %v487_v25 = vadd.f32 %v1034_v5, %v486_v23  ;;  %544 = vadd.xlane.f32.xlu1 %v543_v24 }
  0xb8   : > { %v497_v26 = vmul.f32 %v493_v7, %v487_v25  ;;  %vm492_vm6 = vcmp.ge.f32.partialorder %v487_v25, 0.0 }
  0xba   : > { %v1277_v27 = vsel %vm492_vm6, %v487_v25, %v497_v26 }
  0xbb   : > { %v514_v28 = vsel %vm504_vm3, %v1277_v27, 0.0  ;;  %v536_v29 = vmul.f32 %v1277_v27, %v1277_v27 }
  0xbc   : > { %515 = vadd.xlane.f32.xlu0 %v514_v28  ;;  %v502_v28 = vld [vmem:[%s1409_s4] sm:$0x1] }
  0xbd   : > { %v546_v30 = vsel %vm504_vm3, %v536_v29, 0.0 }
  0xbe   : > { %547 = vadd.xlane.f32.xlu1 %v546_v30 }
  0xc4   : > { %538 = vadd.xlane.f32.xlu0 %v537_v33 }
  0xc6   : > { %541 = vadd.xlane.f32.xlu1 %v540_v34  ;;  %v503_v34 = vld [vmem:[%s1410_s5] sm:$0x1] }
 0x119   : > { %v507_v35 = vpop.xlane.xlu2 %506 }
 0x121   : > { %v510_v36 = vpop.xlane.xlu2 %509 }
 0x122   : > { %v517_v38 = vadd.f32 %v510_v36, %v507_v35 }
 0x124   : > { %v518_v40 = vrot.slane %v517_v38, 4 }
 0x126   : > { %v519_v42 = vadd.f32 %v518_v40, %v517_v38 }
 0x127   : > { %v513_v37 = vpop.xlane.xlu0 %512 }
 0x128   : > { %v520_v47 = vrot.slane %v519_v42, 2 }
 0x129   : > { %v545_v39 = vpop.xlane.xlu1 %544 }
 0x12a   : > { %v521_v52 = vadd.f32 %v520_v47, %v519_v42 }
 0x12c   : > { %v522_v60 = vrot.slane %v521_v52, 1 }
 0x12e   : > { %v523_v3 = vadd.f32 %v522_v60, %v521_v52 }
 0x12f   : > { %v516_v41 = vpop.xlane.xlu0 %515 }
 0x130   : > { %v524_v43 = vadd.f32 %v516_v41, %v513_v37  ;;  %v531_v11 = vmul.f32 0.001953125, %v523_v3  ;;  %v1038_v3 = vld [vmem:[%s1412_s7] ss:$0 sm:$0xff] }
 0x131   : > { %v548_v44 = vpop.xlane.xlu1 %547 }
 0x132   : > { %v525_v45 = vrot.slane %v524_v43, 4  ;;  %v556_v46 = vadd.f32 %v548_v44, %v545_v39  ;;  %v565_v16 = vmul.f32 %v531_v11, %v531_v11 }
 0x134   : > { %v526_v48 = vadd.f32 %v525_v45, %v524_v43  ;;  %v557_v49 = vrot.slane %v556_v46, 4 }
 0x136   : > { %v527_v50 = vrot.slane %v526_v48, 2  ;;  %v558_v51 = vadd.f32 %v557_v49, %v556_v46 }
 0x137   : > { %v539_v55 = vpop.xlane.xlu0 %538 }
 0x138   : > { %v528_v53 = vadd.f32 %v527_v50, %v526_v48  ;;  %v559_v54 = vrot.slane %v558_v51, 2 }
 0x139   : > { %v542_v56 = vpop.xlane.xlu1 %541 }
 0x13a   : > { %v529_v57 = vrot.slane %v528_v53, 1  ;;  %v560_v58 = vadd.f32 %v559_v54, %v558_v51  ;;  %v549_v59 = vadd.f32 %v542_v56, %v539_v55  ;;  %v1037_v56 = vld [vmem:[%s1411_s6 + $0x2] ss:$0 sm:$0xff] }
 0x13c   : > { %v530_v61 = vadd.f32 %v529_v57, %v528_v53  ;;  %v561_v62 = vrot.slane %v560_v58, 1  ;;  %v550_v63 = vrot.slane %v549_v59, 4  ;;  %v1036_v53 = vld [vmem:[%s1411_s6 + $0x1] ss:$0 sm:$0xff] }
 0x13e   : > { %v532_v0 = vmul.f32 0.001953125, %v530_v61  ;;  %v562_v1 = vadd.f32 %v561_v62, %v560_v58  ;;  %v551_v2 = vadd.f32 %v550_v63, %v549_v59 }
 0x140   : > { %v566_v4 = vmul.f32 %v532_v0, %v532_v0  ;;  %v564_v5 = vmul.f32 0.001953125, %v562_v1  ;;  %v552_v6 = vrot.slane %v551_v2, 2 }
 0x142   : > { %v568_v7 = vsub.f32 %v564_v5, %v566_v4  ;;  %v553_v8 = vadd.f32 %v552_v6, %v551_v2 }
 0x144   : > { %v570_v12 = vadd.f32 1e-08, %v568_v7  ;;  %v554_v13 = vrot.slane %v553_v8, 1  ;;  %v680_v7 = vstv %s957_s19  ;;  %s953_s19 = sshll.u32 %s421_s18, 5 }
 0x145   : > { %s423_s29 = scalar_lea.vmem [#allocation6], %s953_s19  ;;  %s1079_s19 = scalar_lea.hbm %s1078_s25, 32 }
 0x146   : > { %1040 = vrsqrt.f32 %v570_v12  ;;  %v555_v14 = vadd.f32 %v554_v13, %v553_v8  ;;  %vm587_vm9 = vweird.f32 %v570_v12  ;;  %s870_s0 = sshll.u32 %s423_s29, 4  ;;  %p1080_p0 = scmp.ne.s32.totalorder %s1078_s25, %s1079_s19  ;;  %s871_s0 = int_to_ptr.vmem [resolvable:$true] %s870_s0 }
 0x147   : > { %p1085_p4 = scmp.lt.s32.totalorder %s1083_s15, %s1079_s19 }
 0x148   : > { %v563_v17 = vmul.f32 0.001953125, %v555_v14  ;;  %p1081_p1 = pnand %p1080_p0, %p1238_p5 }
 0x149   : > { %p1086_p7 = por %p1085_p4, %p1084_p3 }
 0x14a   : > { %v567_v18 = vsub.f32 %v563_v17, %v565_v16  ;;  %p1082_p2 = pneg %p1081_p1 }
 0x14c   : > { %v1041_v19 = vpop.eup %1040  ;;  %v569_v21 = vadd.f32 1e-08, %v567_v18  ;;  %p1087_p8 = pnand %p1086_p7, %p1082_p2 }
 0x14d   : > { %v582_v22 = vmul.f32 %v1041_v19, %v570_v12  ;;  %vm588_vm8 = vweird.f32 %v1041_v19 }
 0x14e   : > { %1042 = vrsqrt.f32 %v569_v21  ;;  %vm589_vm10 = vmor %vm587_vm9, %vm588_vm8  ;;  %vm577_vm12 = vweird.f32 %v569_v21 }
 0x14f   : > { %v583_v23 = vmul.f32 %v1041_v19, %v582_v22 }
 0x151   : > { %v584_v24 = vmul.f32 0.5, %v583_v23 }
 0x153   : > { %v585_v25 = vsub.f32 1.5, %v584_v24 }
 0x154   : > { %v1043_v26 = vpop.eup %1042 }
 0x155   : > { %v586_v29 = vmul.f32 %v1041_v19, %v585_v25  ;;  %v572_v30 = vmul.f32 %v1043_v26, %v569_v21  ;;  %vm578_vm11 = vweird.f32 %v1043_v26 }
 0x156   : > { %vm579_vm13 = vmor %vm577_vm12, %vm578_vm11 }
 0x157   : > { %v590_v31 = vsel %vm589_vm10, %v1041_v19, %v586_v29  ;;  %v573_v32 = vmul.f32 %v1043_v26, %v572_v30 }
 0x158   : > { %v592_v33 = vmul.f32 %v590_v31, %v502_v28 }
 0x159   : > { %v574_v35 = vmul.f32 0.5, %v573_v32 }
 0x15a   : > { %v594_v36 = vmul.f32 %v592_v33, %v532_v0  ;;  %v600_v37 = vperm.slane %v592_v33, 0 }
 0x15b   : > { %v575_v38 = vsub.f32 1.5, %v574_v35 }
 0x15c   : > { %v596_v39 = vsub.f32 %v503_v34, %v594_v36  ;;  %v605_v41 = vmul.f32 %v600_v37, %v1270_v20  ;;  %v606_v42 = vmul.f32 %v600_v37, %v1277_v27  ;;  %v1035_v27 = vld [vmem:[%s1411_s6] ss:$0 sm:$0xff] }
 0x15d   : > { %v576_v40 = vmul.f32 %v1043_v26, %v575_v38 }
 0x15e   : > { %v610_v43 = vperm.slane %v596_v39, 0 }
 0x15f   : > { %v580_v44 = vsel %vm579_vm13, %v1043_v26, %v576_v40 }
 0x160   : > { %v615_v45 = vadd.f32 %v610_v43, %v605_v41  ;;  %v616_v46 = vadd.f32 %v610_v43, %v606_v42  ;;  %v591_v47 = vmul.f32 %v580_v44, %v502_v28 }
 0x162   : > { %624 = vst.msk [vmem:[#allocation2 + $0x1a] sm:$0xff] %vm504_vm3, %v615_v45  ;;  %v593_v48 = vmul.f32 %v591_v47, %v531_v11  ;;  %v599_v49 = vperm.slane %v591_v47, 0 }
 0x163   : > { %625 = vst.msk [vmem:[#allocation2 + $0x22] sm:$0xff] %vm504_vm3, %v616_v46 }
 0x164   : > { %v595_v50 = vsub.f32 %v503_v34, %v593_v48  ;;  %v603_v51 = vmul.f32 %v599_v49, %v1262_v10  ;;  %v604_v52 = vmul.f32 %v599_v49, %v1266_v15 }
 0x166   : > { %v609_v20 = vperm.slane %v595_v50, 0 }
 0x168   : > { %v613_v54 = vadd.f32 %v609_v20, %v603_v51  ;;  %v614_v55 = vadd.f32 %v609_v20, %v604_v52 }
 0x169   : > { %v628_v57 = vld [vmem:[#allocation2 + $0x18] sm:$0xff] }
 0x16a   : > { %v642_v10 = vld [vmem:[#allocation2 + $0x1a] sm:$0xff]  ;;  %622 = vst.msk [vmem:[#allocation2 + $0x2] sm:$0xff] %vm504_vm3, %v613_v54  ;;  %v634_v15 = vmul.f32 %v1035_v27, %v628_v57  ;;  %v643_v61 = vld [vmem:[#allocation2 + $0x22] sm:$0xff] }
 0x16b   : > { %v648_v58 = vmul.f32 %v1036_v53, %v642_v10  ;;  %v656_v59 = vld [vmem:[#allocation2 + $0x1c] sm:$0xff]  ;;  %623 = vst.msk [vmem:[#allocation2 + $0xa] sm:$0xff] %vm504_vm3, %v614_v55  ;;  %v649_v63 = vmul.f32 %v1036_v53, %v643_v61  ;;  %v657_v0 = vld [vmem:[#allocation2 + $0x24] sm:$0xff] }
 0x16c   : > { %v629_v60 = vld [vmem:[#allocation2 + $0x20] sm:$0xff]  ;;  %v662_v2 = vmul.f32 %v1037_v56, %v656_v59  ;;  %v663_v5 = vmul.f32 %v1037_v56, %v657_v0 }
 0x16d   : > { %v635_v62 = vmul.f32 %v1035_v27, %v629_v60  ;;  %v652_v1 = vadd.f32 %v648_v58, %v634_v15 }
 0x16f   : > { %v653_v4 = vadd.f32 %v649_v63, %v635_v62  ;;  %v666_v6 = vadd.f32 %v662_v2, %v652_v1 }
 0x171   : > { %v667_v8 = vadd.f32 %v663_v5, %v653_v4  ;;  %v674_v9 = vadd.f32 %v1038_v3, %v666_v6  ;;  %v626_v12 = vld [vmem:[#allocation2] sm:$0xff] }
 0x172   : > { %v640_v13 = vld [vmem:[#allocation2 + $0x2] sm:$0xff]  ;;  %v632_v16 = vmul.f32 %v1035_v27, %v626_v12  ;;  %v641_v21 = vld [vmem:[#allocation2 + $0xa] sm:$0xff] }
 0x173   : > { %v675_v11 = vadd.f32 %v1038_v3, %v667_v8  ;;  %vm678_vm14 = vcmp.ge.f32.partialorder %v674_v9, 0.0  ;;  %v683_v14 = vmul.f32 %v680_v7, %v674_v9  ;;  %v646_v17 = vmul.f32 %v1036_v53, %v640_v13  ;;  %v654_v18 = vld [vmem:[#allocation2 + $0x4] sm:$0xff]  ;;  %v655_v24 = vld [vmem:[#allocation2 + $0xc] sm:$0xff] }
 0x174   : > { %v627_v19 = vld [vmem:[#allocation2 + $0x8] sm:$0xff]  ;;  %v660_v28 = vmul.f32 %v1037_v56, %v654_v18  ;;  %v647_v29 = vmul.f32 %v1036_v53, %v641_v21  ;;  %v661_v35 = vmul.f32 %v1037_v56, %v655_v24  ;;  %v805_v12 = vld [vmem:[%s1415_s10 + $0x10] sm:$0xff] }
 0x175   : > { %vm679_vm15 = vcmp.ge.f32.partialorder %v675_v11, 0.0  ;;  %v684_v22 = vmul.f32 %v680_v7, %v675_v11  ;;  %v633_v23 = vmul.f32 %v1035_v27, %v627_v19  ;;  %v1316_v25 = vsel %vm678_vm14, %v674_v9, %v683_v14 }
 0x176   : > { %v650_v26 = vadd.f32 %v646_v17, %v632_v16  ;;  %v697_v30 = vsel %vm504_vm3, %v1316_v25, 0.0  ;;  %v721_v31 = vmul.f32 %v1316_v25, %v1316_v25  ;;  %v804_v17 = vld [vmem:[%s1415_s10 + $0x8] sm:$0xff] }
 0x177   : > { %698 = vadd.xlane.f32.xlu2 %v697_v30  ;;  %v1322_v32 = vsel %vm679_vm15, %v675_v11, %v684_v22  ;;  %v651_v34 = vadd.f32 %v647_v29, %v633_v23  ;;  %v806_v11 = vld [vmem:[%s1415_s10 + $0x18] sm:$0xff]  ;;  %v803_v22 = vld [vmem:[%s1415_s10] sm:$0xff] }
 0x178   : > { %v664_v33 = vadd.f32 %v660_v28, %v650_v26  ;;  %v729_v36 = vsel %vm504_vm3, %v721_v31, 0.0  ;;  %v722_v39 = vmul.f32 %v1322_v32, %v1322_v32  ;;  %v700_v50 = vsel %vm504_vm3, %v1322_v32, 0.0  ;;  %977 = vmatpush.msra.mxu2 %v806_v11  ;;  %835 = vmatpush.msra.mxu1 %v806_v11 }
 0x179   : > { %730 = vadd.xlane.f32.xlu1 %v729_v36  ;;  %v665_v38 = vadd.f32 %v661_v35, %v651_v34 }
 0x17a   : > { %v672_v37 = vadd.f32 %v1038_v3, %v664_v33  ;;  %v732_v44 = vsel %vm504_vm3, %v722_v39, 0.0  ;;  %978 = vmatpush.msra.mxu2 %v805_v12  ;;  %836 = vmatpush.msra.mxu1 %v805_v12 }
 0x17b   : > { %v673_v41 = vadd.f32 %v1038_v3, %v665_v38 }
 0x17c   : > { %vm676_vm0 = vcmp.ge.f32.partialorder %v672_v37, 0.0  ;;  %v681_v40 = vmul.f32 %v680_v7, %v672_v37  ;;  %979 = vmatpush.msra.mxu2 %v804_v17  ;;  %837 = vmatpush.msra.mxu1 %v804_v17 }
 0x17d   : > { %vm677_vm1 = vcmp.ge.f32.partialorder %v673_v41, 0.0  ;;  %v682_v43 = vmul.f32 %v680_v7, %v673_v41 }
 0x17e   : > { %v1327_v42 = vsel %vm676_vm0, %v672_v37, %v681_v40  ;;  %980 = vmatpush.msra.mxu2 %v803_v22  ;;  %838 = vmatpush.msra.mxu1 %v803_v22 }
 0x17f   : > { %v691_v45 = vsel %vm504_vm3, %v1327_v42, 0.0  ;;  %733 = vadd.xlane.f32.xlu2 %v732_v44  ;;  %v1332_v46 = vsel %vm677_vm1, %v673_v41, %v682_v43  ;;  %v719_v48 = vmul.f32 %v1327_v42, %v1327_v42 }
 0x180   : > { %692 = vadd.xlane.f32.xlu0 %v691_v45  ;;  %v694_v47 = vsel %vm504_vm3, %v1332_v46, 0.0  ;;  %v720_v51 = vmul.f32 %v1332_v46, %v1332_v46 }
 0x181   : > { %695 = vadd.xlane.f32.xlu1 %v694_v47  ;;  %v723_v49 = vsel %vm504_vm3, %v719_v48, 0.0 }
 0x182   : > { %v726_v52 = vsel %vm504_vm3, %v720_v51, 0.0  ;;  %v689_v51 = vld [vmem:[%s1413_s8] sm:$0x1] }
 0x187   : > { %724 = vadd.xlane.f32.xlu2 %v723_v49 }
 0x188   : > { %701 = vadd.xlane.f32.xlu0 %v700_v50 }
 0x190   : > { %727 = vadd.xlane.f32.xlu0 %v726_v52 }
 0x1ea   : > { %v699_v20 = vpop.xlane.xlu2 %698 }
 0x1ec   : > { %v731_v27 = vpop.xlane.xlu1 %730 }
 0x1f2   : > { %v734_v54 = vpop.xlane.xlu2 %733 }
 0x1f3   : > { %v693_v53 = vpop.xlane.xlu0 %692  ;;  %v742_v55 = vadd.f32 %v734_v54, %v731_v27 }
 0x1f4   : > { %v696_v56 = vpop.xlane.xlu1 %695 }
 0x1f5   : > { %v743_v57 = vrot.slane %v742_v55, 4  ;;  %v703_v10 = vadd.f32 %v696_v56, %v693_v53 }
 0x1f7   : > { %v744_v15 = vadd.f32 %v743_v57, %v742_v55  ;;  %v704_v58 = vrot.slane %v703_v10, 4  ;;  %v690_v55 = vld [vmem:[%s1414_s9] sm:$0x1] }
 0x1f9   : > { %v705_v59 = vadd.f32 %v704_v58, %v703_v10  ;;  %v745_v61 = vrot.slane %v744_v15, 2 }
 0x1fa   : > { %v725_v5 = vpop.xlane.xlu2 %724 }
 0x1fb   : > { %v702_v60 = vpop.xlane.xlu0 %701  ;;  %v706_v63 = vrot.slane %v705_v59, 2  ;;  %v746_v1 = vadd.f32 %v745_v61, %v744_v15 }
 0x1fc   : > { %v710_v62 = vadd.f32 %v702_v60, %v699_v20 }
 0x1fd   : > { %v707_v3 = vadd.f32 %v706_v63, %v705_v59  ;;  %v747_v7 = vrot.slane %v746_v1, 1 }
 0x1fe   : > { %v711_v0 = vrot.slane %v710_v62, 4 }
 0x1ff   : > { %v708_v13 = vrot.slane %v707_v3, 1  ;;  %v748_v18 = vadd.f32 %v747_v7, %v746_v1 }
 0x200   : > { %v712_v2 = vadd.f32 %v711_v0, %v710_v62 }
 0x201   : > { %v709_v23 = vadd.f32 %v708_v13, %v707_v3  ;;  %v750_v28 = vmul.f32 0.001953125, %v748_v18 }
 0x202   : > { %v713_v4 = vrot.slane %v712_v2, 2 }
 0x203   : > { %v728_v6 = vpop.xlane.xlu0 %727  ;;  %v717_v31 = vmul.f32 0.001953125, %v709_v23 }
 0x204   : > { %v714_v8 = vadd.f32 %v713_v4, %v712_v2  ;;  %v735_v9 = vadd.f32 %v728_v6, %v725_v5 }
 0x205   : > { %v751_v37 = vmul.f32 %v717_v31, %v717_v31 }
 0x206   : > { %v715_v14 = vrot.slane %v714_v8, 1  ;;  %v736_v16 = vrot.slane %v735_v9, 4 }
 0x208   : > { %v716_v19 = vadd.f32 %v715_v14, %v714_v8  ;;  %v737_v21 = vadd.f32 %v736_v16, %v735_v9 }
 0x20a   : > { %v718_v24 = vmul.f32 0.001953125, %v716_v19  ;;  %v738_v26 = vrot.slane %v737_v21, 2 }
 0x20c   : > { %v752_v29 = vmul.f32 %v718_v24, %v718_v24  ;;  %v739_v30 = vadd.f32 %v738_v26, %v737_v21 }
 0x20e   : > { %v754_v33 = vsub.f32 %v750_v28, %v752_v29  ;;  %v740_v34 = vrot.slane %v739_v30, 1 }
 0x210   : > { %v756_v35 = vadd.f32 1e-08, %v754_v33  ;;  %v741_v36 = vadd.f32 %v740_v34, %v739_v30 }
 0x212   : > { %1044 = vrsqrt.f32 %v756_v35  ;;  %v749_v38 = vmul.f32 0.001953125, %v741_v36  ;;  %vm773_vm4 = vweird.f32 %v756_v35 }
 0x214   : > { %v753_v39 = vsub.f32 %v749_v38, %v751_v37 }
 0x216   : > { %v755_v40 = vadd.f32 1e-08, %v753_v39 }
 0x218   : > { %v1045_v41 = vpop.eup %1044  ;;  %1046 = vrsqrt.f32 %v755_v40  ;;  %vm763_vm7 = vweird.f32 %v755_v40 }
 0x219   : > { %v768_v43 = vmul.f32 %v1045_v41, %v756_v35  ;;  %vm774_vm2 = vweird.f32 %v1045_v41 }
 0x21a   : > { %vm775_vm5 = vmor %vm773_vm4, %vm774_vm2 }
 0x21b   : > { %v769_v44 = vmul.f32 %v1045_v41, %v768_v43 }
 0x21d   : > { %v770_v45 = vmul.f32 0.5, %v769_v44 }
 0x21e   : > { %v1047_v47 = vpop.eup %1046 }
 0x21f   : > { %v758_v48 = vmul.f32 %v1047_v47, %v755_v40  ;;  %v771_v49 = vsub.f32 1.5, %v770_v45  ;;  %vm764_vm6 = vweird.f32 %v1047_v47 }
 0x220   : > { %vm765_vm8 = vmor %vm763_vm7, %vm764_vm6 }
 0x221   : > { %v759_v50 = vmul.f32 %v1047_v47, %v758_v48  ;;  %v772_v52 = vmul.f32 %v1045_v41, %v771_v49 }
 0x223   : > { %v760_v20 = vmul.f32 0.5, %v759_v50  ;;  %v776_v27 = vsel %vm775_vm5, %v1045_v41, %v772_v52 }
 0x224   : > { %v778_v53 = vmul.f32 %v776_v27, %v689_v51 }
 0x225   : > { %v761_v54 = vsub.f32 1.5, %v760_v20 }
 0x226   : > { %v780_v56 = vmul.f32 %v778_v53, %v718_v24  ;;  %v786_v57 = vperm.slane %v778_v53, 0 }
 0x227   : > { %v762_v10 = vmul.f32 %v1047_v47, %v761_v54 }
 0x228   : > { %v782_v15 = vsub.f32 %v690_v55, %v780_v56  ;;  %v791_v59 = vmul.f32 %v786_v57, %v1316_v25  ;;  %v792_v5 = vmul.f32 %v786_v57, %v1322_v32 }
 0x229   : > { %v766_v58 = vsel %vm765_vm8, %v1047_v47, %v762_v10 }
 0x22a   : > { %v796_v60 = vperm.slane %v782_v15, 0  ;;  %v777_v61 = vmul.f32 %v766_v58, %v689_v51 }
 0x22c   : > { %v801_v62 = vadd.f32 %v796_v60, %v791_v59  ;;  %v779_v63 = vmul.f32 %v777_v61, %v717_v31  ;;  %v785_v0 = vperm.slane %v777_v61, 0  ;;  %v802_v6 = vadd.f32 %v796_v60, %v792_v5 }
 0x22e   : > { %965 = vmatmul.msk.f32.vlgmr.msra.gmra.mxu2 %vm504_vm3, %v801_v62  ;;  %v781_v1 = vsub.f32 %v690_v55, %v779_v63  ;;  %v789_v2 = vmul.f32 %v785_v0, %v1327_v42  ;;  %v790_v25 = vmul.f32 %v785_v0, %v1332_v46  ;;  %v1039_v42 = vld [vmem:[%s1416_s11] ss:$0 sm:$0xff] }
 0x230   : > { %v795_v3 = vperm.slane %v781_v1, 0 }
 0x232   : > { %v799_v4 = vadd.f32 %v795_v3, %v789_v2  ;;  %v800_v7 = vadd.f32 %v795_v3, %v790_v25 }
 0x234   : > { %963 = vmatmul.msk.f32.vlgmr.msra.gmra.mxu1 %vm504_vm3, %v799_v4 }
 0x236   : > { %966 = vmatmul.msk.f32.gmra.mxu2 %vm504_vm3, %v802_v6 }
 0x23c   : > { %964 = vmatmul.msk.f32.gmra.mxu1 %vm504_vm3, %v800_v7 }
 0x2b1   : > { %v840_v8 = vpop.f32.mrf.mxu1  ;;  %v846_v9 = vpop.f32.mrf.mxu2 }
 0x2b2   : > { %v841_v11 = vadd.f32 %v1039_v42, %v840_v8  ;;  %v847_v32 = vadd.f32 %v1039_v42, %v846_v9 }
 0x2b4   : > { %852 = vst [vmem:[%s423_s29] sm:$0xff] %v841_v11 }
 0x2b5   : > { %854 = vst [vmem:[%s423_s29 + $0x10] sm:$0xff] %v847_v32 }
 0x2b9   : > { %v843_v46 = vpop.f32.mrf.mxu1  ;;  %v849_v12 = vpop.f32.mrf.mxu2 }
 0x2ba   : > { %v844_v13 = vadd.f32 %v1039_v42, %v843_v46  ;;  %v850_v14 = vadd.f32 %v1039_v42, %v849_v12 }
 0x2bc   : > { %853 = vst [vmem:[%s423_s29 + $0x8] sm:$0xff] %v844_v13 }
 0x2bd   : > { %855 = vst [vmem:[%s423_s29 + $0x18] sm:$0xff] %v850_v14 }
 0x2be   : > { %1090 = shalt.err (!%p1087_p8)
}
 0x2bf   : > { %s1133_s18 = smov 128   ;;  %s1134_s29 = smov 8  }
 0x2c0   : > { %985 = dma.vmem_to_hbm [thread:$0]  (%p1238_p5), %s871_s0, 512, %s873_s1, %s857_s20, %s1133_s18, %s1133_s18, %s1134_s29  }
 0x2c1 PF: > { %p997_p9 = scmp.ge.s32.totalorder %s1129_s24, 2  ;;  %s887_s26 = sand.u32 1, %s1117_s21  }
 0x2c2   : > { %s888_s28 = scalar_lea.sflag [#allocation4], %s887_s26 }
 0x2c3   : > { %p992_p10 = pnand %p997_p9, %p1242_p6 }
 0x2c5   : > { %p993_p11 = pneg %p992_p10 }
 0x2c7   : > { %1112 = dma.done.wait (%p993_p11), %s888_s28, 512  }
 0x2c8   : > { %1114 = vsyncadd (%p993_p11), %s888_s28, 4294966784  ;;  %p23_p12 = scmp.ge.s32.totalorder %s1225_s27, 4   ;;  %s1424_s21 = smov %s1121_s22 }
 0x2c9   : > { %s1425_s22 = smov %s1125_s23  ;;  %s1426_s23 = smov %s1236_s30 }
 0x2ca   : > { %s1427_s24 = smov %s1225_s27  ;;  %25 = sbr.rel (!%p23_p12) target bundleno = 7 (0x7), region = 108 }
 0x2cf   :  { %894 = vsyncpa [#allocation4], 1 }
 0x2d0   :  { %896 = vsyncpa [#allocation4 + $0x1], 1 }
 0x2d1   :  { %897 = vsyncpa [#allocation5], 1 }
 0x2d2   :  { %899 = vsyncpa [#allocation5 + $0x1], 1 }

</bundles_post_ra>
